<compile_context>
chip_gen: v7x
topology: tpu7x:2x2x1
jax: 0.10.0
libtpu: 0.0.40
codegen_flags: <defaults>
</compile_context>

<pallas_src>
import jax
import jax.numpy as jnp
import numpy as np
from jax.experimental import pallas as pl
from jax.experimental.pallas import tpu as pltpu


def _round_up(n, m):
    return ((n + m - 1) // m) * m


def _vmem_capacity_bytes():
    """Physical VMEM per TensorCore; conservative fallback if the query fails."""
    try:
        info = pltpu.get_tpu_info()
        cap = getattr(info, "vmem_capacity_bytes", None)
        if cap:
            return int(cap)
    except Exception:
        pass
    return 64 * 1024 * 1024  # v7x per-core size; safe lower bound everywhere


def upsample_nearest(x, scale_factor, mode="nearest"):
    """Nearest-neighbour upsample of an NCHW tensor by an integer scale factor."""
    assert mode == "nearest", "only mode='nearest' is implemented"
    sf = int(scale_factor)
    assert sf >= 1 and float(scale_factor) == float(sf), (
        "only integer scale factors supported")  # TODO(synk): non-integer scales
    N, C, H, W = x.shape
    if sf == 1:
        return x
    Ho, Wo = H * sf, W * sf
    Rows = N * C * H                       # flattened input rows
    itemsize = jnp.dtype(x.dtype).itemsize

    # ---- column (lane) chunking: nearest replication is block diagonal, so a
    # chunk of Wc_in input columns always maps through the SAME (Wc_in, Wc_in*sf)
    # 0/1 matrix -> K and the resident matrix stay bounded for large W.
    max_wc_out = 512
    if Wo <= max_wc_out:
        Wc_in = W
    else:
        Wc_in = 1
        for d in range(1, W + 1):
            if W % d == 0 and d * sf <= max_wc_out:
                Wc_in = d
        if W // Wc_in > 16:                # too many tiny chunks -> don't chunk
            Wc_in = W
    Wc_out = Wc_in * sf
    n_chunks = W // Wc_in

    # ---- row folding into lanes (lane-dense output blocks) -------------------
    if sf * Wo >= 128:
        Rin = 1
    else:
        divs = [d for d in range(1, min(Rows, 64) + 1) if Rows % d == 0]
        cands = [d for d in divs if d * sf * Wo >= 128]
        if not cands:
            Rin = divs[-1]
        else:
            d_min = cands[0]
            exact = [d for d in cands
                     if (d * sf * Wo) % 128 == 0 and d <= 4 * d_min]
            Rin = exact[0] if exact else d_min
    G = Rin * sf                           # output rows folded per super-row
    K2 = Rin * W                           # lane width of an input super-row
    N2 = G * Wo                            # lane width of an output super-row
    Rg = Rows // Rin                       # number of super-rows

    # ---- constant 0/1 column-replication matrix (built once on host) ---------
    col_rep = np.zeros((Wc_in, Wc_out), dtype=np.float32)
    col_rep[np.arange(Wc_out) // sf, np.arange(Wc_out)] = 1.0
    if jnp.issubdtype(x.dtype, jnp.floating):
        mat_dtype = x.dtype                # 0/1 is exact in bf16/f16/f32
        cast_to_f32 = False
    else:
        # TODO(synk): integer inputs go through an f32 matmul (exact below 2^24)
        mat_dtype = jnp.float32
        cast_to_f32 = True
    mat = jnp.asarray(col_rep, dtype=mat_dtype)

    # ---- static per-tile schedule: (input lane offset, output lane offsets) --
    pieces = []
    for rin in range(Rin):
        for c in range(n_chunks):
            in_off = rin * W + c * Wc_in
            out_offs = tuple((rin * sf + r) * Wo + c * Wc_out for r in range(sf))
            pieces.append((in_off, out_offs))

    def kernel(m_ref, x_ref, o_ref):
        m = m_ref[...]
        for in_off, out_offs in pieces:
            xs = x_ref[:, in_off:in_off + Wc_in]
            if cast_to_f32:
                xs = xs.astype(jnp.float32)
            # K = Wc_in only; 0/1 RHS is exactly representable, so the multi-pass
            # f32 matmul reproduces the f32 input values exactly.
            y = jnp.dot(xs, m, preferred_element_type=jnp.float32)
            y = y.astype(o_ref.dtype)
            for out_off in out_offs:       # row replication = repeated stores
                o_ref[:, out_off:out_off + Wc_out] = y

    # ---- generation-aware VMEM budgeting & row-block sizing ------------------
    cap = _vmem_capacity_bytes()
    if cap >= 100 * 2**20:                 # v5e / v6e: 128 MiB physical VMEM
        vmem_limit = 64 * 2**20
    else:                                  # v7x: 64 MiB physical per core
        vmem_limit = min(48 * 2**20, (cap * 3) // 4)

    K2p = _round_up(K2, 128)               # lane-padded VMEM widths
    N2p = _round_up(N2, 128)
    m_bytes = (_round_up(Wc_out, 128) * _round_up(Wc_in, 8)
               * jnp.dtype(mat_dtype).itemsize)
    headroom = 8 * 2**20
    budget = max(2 * 2**20, vmem_limit - 2 * m_bytes - headroom)
    # double-buffered in/out blocks + ~1x width for f32 compute intermediates
    row_bytes = 2 * (K2p + N2p) * itemsize + (K2p + N2p) * 4

    sub = 8 * max(1, 4 // itemsize)        # sublane tile: 8 f32, 16 bf16, 32 i8
    Bm = min(budget // row_bytes, Rg, 4096)
    if Rg >= 4 * sub:                      # keep >= ~4 grid steps (v7x megacore)
        Bm = min(Bm, _round_up(pl.cdiv(Rg, 4), sub))
    if Bm >= 512:
        Bm = (Bm // 256) * 256             # clean LHS tiling for large blocks
    else:
        Bm = max(sub, (Bm // sub) * sub)
    Bm = int(max(1, min(Bm, Rg)))

    grid = (pl.cdiv(Rg, Bm),)

    x3 = x.reshape(Rg, K2)                 # contiguous view -> free
    out_shape = jax.ShapeDtypeStruct((Rg, N2), x.dtype)

    cost = pl.CostEstimate(
        flops=2 * Rows * W * Wc_out,
        transcendentals=0,
        bytes_accessed=(Rows * W + N * C * Ho * Wo) * itemsize
        + int(mat.size) * jnp.dtype(mat_dtype).itemsize,
    )
    cparams = pltpu.CompilerParams(
        dimension_semantics=("parallel",),
        vmem_limit_bytes=int(vmem_limit),
    )

    def build(single_buffer_m):
        if single_buffer_m:
            # constant matrix never changes -> single-buffer it to free VMEM
            m_spec = pl.BlockSpec((Wc_in, Wc_out), lambda i: (0, 0),
                                  pipeline_mode=pl.Buffered(1))
        else:
            m_spec = pl.BlockSpec((Wc_in, Wc_out), lambda i: (0, 0))
        return pl.pallas_call(
            kernel,
            out_shape=out_shape,
            grid=grid,
            in_specs=[m_spec, pl.BlockSpec((Bm, K2), lambda i: (i, 0))],
            out_specs=pl.BlockSpec((Bm, N2), lambda i: (i, 0)),
            compiler_params=cparams,
            cost_estimate=cost,
        )

    try:
        out3 = build(True)(mat, x3)
    except Exception:
        # fall back to default double-buffering of the (tiny) constant matrix
        out3 = build(False)(mat, x3)

    return out3.reshape(N, C, Ho, Wo)


class Upsample:
    """Pallas equivalent of the PyTorch Upsample module (nearest mode)."""

    def __init__(self, scale_factor, mode="nearest"):
        self.scale_factor = scale_factor
        self.mode = mode

    def __call__(self, x):
        return upsample_nearest(x, self.scale_factor, self.mode)


if __name__ == "__main__":
    key = jax.random.PRNGKey(0)
    N, C, H, W = 2, 4, 16, 16
    scale_factor = 2

    x = jax.random.normal(key, (N, C, H, W), dtype=jnp.float32)

    module = Upsample(scale_factor)
    y = jax.block_until_ready(module(x))

    # Reference: nearest upsample with an integer scale factor (matches
    # F.interpolate(..., mode='nearest')).
    x_np = np.asarray(x)
    ref = np.repeat(np.repeat(x_np, scale_factor, axis=2), scale_factor, axis=3)

    assert y.shape == (N, C, H * scale_factor, W * scale_factor), y.shape
    np.testing.assert_allclose(np.asarray(y), ref, rtol=1e-6, atol=1e-6)

    print("KERNEL_OK")
</pallas_src>

<mosaic_0001>
module attributes {stable_mosaic.version = 11 : i64} {
  func.func @kernel(%arg0: i32, %arg1: memref<16x32xf32, #tpu.memory_space<vmem>>, %arg2: memref<16x32xf32, #tpu.memory_space<vmem>>, %arg3: memref<16x128xf32, #tpu.memory_space<vmem>>) attributes {dimension_semantics = [#tpu.dimension_semantics<parallel>], iteration_bounds = array<i64: 4>, scalar_prefetch = 0 : i64, scratch_operands = 0 : i64, tpu.core_type = #tpu.core_type<tc>, window_params = [{pipeline_mode = #tpu.pipeline_mode<synchronous>, transform_indices = @transform_0, window_bounds = array<i64: 16, 32>}, {transform_indices = @transform_1, window_bounds = array<i64: 16, 32>}, {transform_indices = @transform_2, window_bounds = array<i64: 16, 128>}]} {
    %c0 = arith.constant 0 : index
    %c0_0 = arith.constant 0 : index
    %0 = vector.load %arg1[%c0, %c0_0] : memref<16x32xf32, #tpu.memory_space<vmem>>, vector<16x32xf32>
    %c0_1 = arith.constant 0 : index
    %c0_2 = arith.constant 0 : index
    %1 = vector.load %arg2[%c0_1, %c0_2] : memref<16x32xf32, #tpu.memory_space<vmem>>, vector<16x16xf32>
    %cst = arith.constant dense<0.000000e+00> : vector<16x32xf32>
    %2 = tpu.matmul %1, %0, %cst {dimension_numbers = #tpu.dot_dimension_numbers<[1], [0], [0], [1], [0, 0, 1, 1], [], []>} : vector<16x16xf32>, vector<16x32xf32>, vector<16x32xf32> -> vector<16x32xf32>
    %c0_3 = arith.constant 0 : index
    %c0_4 = arith.constant 0 : index
    %3 = vector.load %arg3[%c0_3, %c0_4] : memref<16x128xf32, #tpu.memory_space<vmem>>, vector<16x32xf32>
    tpu.vector_store %arg3[%c0_3, %c0_4], %2 {strides = array<i32>} : memref<16x128xf32, #tpu.memory_space<vmem>>, vector<16x32xf32>,
    %c0_5 = arith.constant 0 : index
    %c32 = arith.constant 32 : index
    %4 = vector.load %arg3[%c0_5, %c32] : memref<16x128xf32, #tpu.memory_space<vmem>>, vector<16x32xf32>
    tpu.vector_store %arg3[%c0_5, %c32], %2 {strides = array<i32>} : memref<16x128xf32, #tpu.memory_space<vmem>>, vector<16x32xf32>,
    %c0_6 = arith.constant 0 : index
    %c16 = arith.constant 16 : index
    %5 = vector.load %arg2[%c0_6, %c16] : memref<16x32xf32, #tpu.memory_space<vmem>>, vector<16x16xf32>
    %cst_7 = arith.constant dense<0.000000e+00> : vector<16x32xf32>
    %6 = tpu.matmul %5, %0, %cst_7 {dimension_numbers = #tpu.dot_dimension_numbers<[1], [0], [0], [1], [0, 0, 1, 1], [], []>} : vector<16x16xf32>, vector<16x32xf32>, vector<16x32xf32> -> vector<16x32xf32>
    %c0_8 = arith.constant 0 : index
    %c64 = arith.constant 64 : index
    %7 = vector.load %arg3[%c0_8, %c64] : memref<16x128xf32, #tpu.memory_space<vmem>>, vector<16x32xf32>
    tpu.vector_store %arg3[%c0_8, %c64], %6 {strides = array<i32>} : memref<16x128xf32, #tpu.memory_space<vmem>>, vector<16x32xf32>,
    %c0_9 = arith.constant 0 : index
    %c96 = arith.constant 96 : index
    %8 = vector.load %arg3[%c0_9, %c96] : memref<16x128xf32, #tpu.memory_space<vmem>>, vector<16x32xf32>
    tpu.vector_store %arg3[%c0_9, %c96], %6 {strides = array<i32>} : memref<16x128xf32, #tpu.memory_space<vmem>>, vector<16x32xf32>,
    return
  }
  func.func @transform_0(%arg0: i32) -> (i32, i32) {
    %c0_i32 = arith.constant 0 : i32
    %c0_i32_0 = arith.constant 0 : i32
    %c0_i32_1 = arith.constant 0 : i32
    return %c0_i32, %c0_i32_0 : i32, i32
  }
  func.func @transform_1(%arg0: i32) -> (i32, i32) {
    %c0_i32 = arith.constant 0 : i32
    %c0_i32_0 = arith.constant 0 : i32
    return %arg0, %c0_i32 : i32, i32
  }
  func.func @transform_2(%arg0: i32) -> (i32, i32) {
    %c0_i32 = arith.constant 0 : i32
    %c0_i32_0 = arith.constant 0 : i32
    return %arg0, %c0_i32 : i32, i32
  }
}

module attributes {stable_mosaic.version = 11 : i64} {
  func.func @kernel(%arg0: i32, %arg1: memref<16x32xf32, #tpu.memory_space<vmem>>, %arg2: memref<16x32xf32, #tpu.memory_space<vmem>>, %arg3: memref<16x128xf32, #tpu.memory_space<vmem>>) attributes {dimension_semantics = [#tpu.dimension_semantics<parallel>], iteration_bounds = array<i64: 4>, scalar_prefetch = 0 : i64, scratch_operands = 0 : i64, tpu.core_type = #tpu.core_type<tc>, window_params = [{pipeline_mode = #tpu.pipeline_mode<synchronous>, transform_indices = @transform_0, window_bounds = array<i64: 16, 32>}, {transform_indices = @transform_1, window_bounds = array<i64: 16, 32>}, {transform_indices = @transform_2, window_bounds = array<i64: 16, 128>}]} {
    %c0 = arith.constant 0 : index
    %c0_0 = arith.constant 0 : index
    %0 = vector.load %arg1[%c0, %c0_0] : memref<16x32xf32, #tpu.memory_space<vmem>>, vector<16x32xf32>
    %c0_1 = arith.constant 0 : index
    %c0_2 = arith.constant 0 : index
    %1 = vector.load %arg2[%c0_1, %c0_2] : memref<16x32xf32, #tpu.memory_space<vmem>>, vector<16x16xf32>
    %cst = arith.constant dense<0.000000e+00> : vector<16x32xf32>
    %2 = tpu.matmul %1, %0, %cst {dimension_numbers = #tpu.dot_dimension_numbers<[1], [0], [0], [1], [0, 0, 1, 1], [], []>} : vector<16x16xf32>, vector<16x32xf32>, vector<16x32xf32> -> vector<16x32xf32>
    %c0_3 = arith.constant 0 : index
    %c0_4 = arith.constant 0 : index
    %3 = vector.load %arg3[%c0_3, %c0_4] : memref<16x128xf32, #tpu.memory_space<vmem>>, vector<16x32xf32>
    tpu.vector_store %arg3[%c0_3, %c0_4], %2 {strides = array<i32>} : memref<16x128xf32, #tpu.memory_space<vmem>>, vector<16x32xf32>,
    %c0_5 = arith.constant 0 : index
    %c32 = arith.constant 32 : index
    %4 = vector.load %arg3[%c0_5, %c32] : memref<16x128xf32, #tpu.memory_space<vmem>>, vector<16x32xf32>
    tpu.vector_store %arg3[%c0_5, %c32], %2 {strides = array<i32>} : memref<16x128xf32, #tpu.memory_space<vmem>>, vector<16x32xf32>,
    %c0_6 = arith.constant 0 : index
    %c16 = arith.constant 16 : index
    %5 = vector.load %arg2[%c0_6, %c16] : memref<16x32xf32, #tpu.memory_space<vmem>>, vector<16x16xf32>
    %cst_7 = arith.constant dense<0.000000e+00> : vector<16x32xf32>
    %6 = tpu.matmul %5, %0, %cst_7 {dimension_numbers = #tpu.dot_dimension_numbers<[1], [0], [0], [1], [0, 0, 1, 1], [], []>} : vector<16x16xf32>, vector<16x32xf32>, vector<16x32xf32> -> vector<16x32xf32>
    %c0_8 = arith.constant 0 : index
    %c64 = arith.constant 64 : index
    %7 = vector.load %arg3[%c0_8, %c64] : memref<16x128xf32, #tpu.memory_space<vmem>>, vector<16x32xf32>
    tpu.vector_store %arg3[%c0_8, %c64], %6 {strides = array<i32>} : memref<16x128xf32, #tpu.memory_space<vmem>>, vector<16x32xf32>,
    %c0_9 = arith.constant 0 : index
    %c96 = arith.constant 96 : index
    %8 = vector.load %arg3[%c0_9, %c96] : memref<16x128xf32, #tpu.memory_space<vmem>>, vector<16x32xf32>
    tpu.vector_store %arg3[%c0_9, %c96], %6 {strides = array<i32>} : memref<16x128xf32, #tpu.memory_space<vmem>>, vector<16x32xf32>,
    return
  }
  func.func @transform_0(%arg0: i32) -> (i32, i32) {
    %c0_i32 = arith.constant 0 : i32
    %c0_i32_0 = arith.constant 0 : i32
    %c0_i32_1 = arith.constant 0 : i32
    return %c0_i32, %c0_i32_0 : i32, i32
  }
  func.func @transform_1(%arg0: i32) -> (i32, i32) {
    %c0_i32 = arith.constant 0 : i32
    %c0_i32_0 = arith.constant 0 : i32
    return %arg0, %c0_i32 : i32, i32
  }
  func.func @transform_2(%arg0: i32) -> (i32, i32) {
    %c0_i32 = arith.constant 0 : i32
    %c0_i32_0 = arith.constant 0 : i32
    return %arg0, %c0_i32 : i32, i32
  }
}

</mosaic_0001>

<bundles_post_ra>
// kernel: tpu_custom_call.1
= control target key start
LH: loop header
LB: loop body
LE: loop exit
PB: predicated region body
PF: predicated region fallthrough
CT: control target
= control target key end

     0   :  { %7 = vsyncpa [#allocation3], 0  ;;  %s729_s0 = inlined_call_operand.vmem [shape: f32[16,32], index: 0, kind: input, shape index: {}]   ;;  %s730_s1 = inlined_call_operand.vmem [shape: f32[64,32], index: 1, kind: input, shape index: {}]   ;;  %s731_s2 = inlined_call_operand.hbm [shape: f32[64,128], index: 2, kind: output, shape index: {}]  }
   0x1   :  { %9 = vsyncpa [#allocation3 + $0x1], 0  ;;  %s606_s9 = smov 0   ;;  %s608_s10 = smov 0  }
   0x2   :  { %s610_s11 = smov 0   ;;  %s612_s12 = smov 0  }
   0x3 LB: > { %s627_s13 = sadd.s32 4294967295, %s582_s12   ;;  %s428_s14 = sadd.s32 4294967294, %s582_s12   ;;  %s582_s12 = sphi %s612_s12, %s737_s12   ;;  %s578_s11 = sphi %s610_s11, %s736_s11   ;;  %s574_s10 = sphi %s608_s10, %s735_s10   ;;  %s570_s9 = sphi %s606_s9, %s734_s9  }
   0x4   : > { %s631_s15 = sadd.s32 1, %s582_s12   ;;  %s69_s16 = sadd.s32 1, %s578_s11 }
   0x5   : > { %s66_s17 = ssub.s32 %s582_s12, %s631_s15  ;;  %p79_p0 = scmp.ne.s32.totalorder %s578_s11, %s574_s10 }
   0x6   : > { %p67_p1 = scmp.eq.s32.totalorder %s66_s17, 0  ;;  %p80_p2 = scmp.eq.s32.totalorder %s627_s13, 3 }
   0x7   : > { %p85_p3 = scmp.ne.s32.totalorder %s574_s10, %s570_s9  ;;  %p86_p4 = scmp.eq.s32.totalorder %s428_s14, 3 }
   0x8   : > { %s642_s18 = scalar_select %p67_p1, %s578_s11, %s69_s16  }
   0x9   : > { %p644_p5 = por %p80_p2, %p79_p0  ;;  %p648_p6 = por %p86_p4, %p85_p3 }
   0xa   : > { %p431_p7 = scmp.ge.s32.totalorder %s582_s12, 1  ;;  %p116_p8 = scmp.lt.s32.totalorder %s582_s12, 5 }
   0xc   : > { %p117_p9 = pnand %p431_p7, %p116_p8 }
   0xd   : > { %s433_s21 = sshll.u32 (!%p117_p9), %s627_s13, 1  ;;  %v145_v0 = vld [vmem:[%s729_s0] sm:$0xff] (!%p117_p9)  ;;  %v146_v1 = vld [vmem:[%s729_s0 + $0x8] sm:$0xff] (!%p117_p9)  ;;  %vm149_vm0 = vcmask (!%p117_p9), 130048   ;;  %s584_s30 = smov (!%p117_p9), 112   ;;  %vm231_vm1 = vcmask (!%p117_p9), 261120  }
   0xe   : > { %120 = sbr.rel (%p117_p9) target bundleno = 491 (0x1eb), region = 28  ;;  %p139_p10 = scmp.lt.s32.totalorder (!%p117_p9), %s433_s21, 7  ;;  %v467_v2 = vpack.c.bf16 (!%p117_p9), %v146_v1, %v145_v0  ;;  %vm242_vm2 = vcmask (!%p117_p9), 523520   ;;  %vm340_vm3 = vcmask (!%p117_p9), 785920   ;;  %vm349_vm4 = vcmask (!%p117_p9), 1048320  }
   0xf   : > { %s135_s3 = sand.u32 (!%p117_p9), 1, %s574_s10   ;;  %s585_s6 = smov (!%p117_p9), 32  }
  0x10   : > { %468 = vmatprep.subr.bf16.mxu0 (!%p117_p9), %v467_v2  ;;  %472 = vmatprep.subr.bf16.mxu1 (!%p117_p9), %v467_v2  ;;  %s432_s4 = sshll.u32 (!%p117_p9), %s135_s3, 4  ;;  %s586_s7 = smov (!%p117_p9), 64  }
  0x11   : > { %470 = vmatpush3.bf16.msra.mxu0 (!%p117_p9), %v467_v2  ;;  %474 = vmatpush3.bf16.msra.mxu1 (!%p117_p9), %v467_v2  ;;  %s667_s5 = scalar_lea.vmem (!%p117_p9), [#allocation2], %s432_s4  ;;  %s587_s8 = smov (!%p117_p9), 96  }
  0x12   : > { %s444_s14 = sshll.u32 (!%p117_p9), %s627_s13, 8  ;;  %s366_s16 = sshll.u32 (!%p117_p9), %s667_s5, 4  ;;  %s682_s16 = int_to_ptr.vmem [resolvable:$true] %s366_s16 }
  0x13   : > { %s680_s22 = scalar_lea.hbm (!%p117_p9), %s731_s2, %s444_s14  ;;  %s688_s13 = scalar_lea.sflag (!%p117_p9), [#allocation3], %s135_s3 }
  0x14   : > { %s520_s23 = scalar_lea.vmem (!%p117_p9), %s682_s16, 256  ;;  %s588_s24 = smov (!%p117_p9), [#allocation2]  }
  0x15   : > { %s739_s21 = smov (!%p139_p10, %s433_s21), 7  ;;  %p521_p11 = scmp.ne.s32.totalorder %s682_s16, %s520_s23 }
  0x16   : > { %s434_s26 = sshll.u32 %s739_s21, 3  ;;  %s524_s25 = sshll.u32 %s588_s24, 4  ;;  %s525_s25 = int_to_ptr.vmem [resolvable:$false] %s524_s25 }
  0x17   : > { %s142_s29 = scalar_lea.vmem %s730_s1, %s434_s26  ;;  %p522_p12 = pnand %p521_p11, %p644_p5 }
  0x18   : > { %v245_v3 = vld [vmem:[%s142_s29] sm:$0xff]  ;;  %v246_v4 = vld [vmem:[%s142_s29 + $0x8] sm:$0xff]  ;;  %s526_s26 = scalar_lea.vmem %s525_s25, 512  ;;  %p527_p0 = scmp.lt.s32.totalorder %s682_s16, %s525_s25 }
  0x19   : > { %249 = vrot.lane.b32.xlu0 %v245_v3, %s584_s30  ;;  %457 = vmatprep.mubr.msk.f32.mxu0 %vm149_vm0, %v245_v3  ;;  %p523_p13 = pneg %p522_p12  ;;  %p528_p1 = scmp.lt.s32.totalorder %s526_s26, %s520_s23 }
  0x1a   : > { %458 = vmatmul.mubr.msk.f32.vlgmr.msra.gmra.mrb[0].mxu0 %vm149_vm0, %v246_v4 }
  0x1b   : > { %p529_p2 = por %p528_p1, %p527_p0 }
  0x1d   : > { %251 = vrot.lane.b32.xlu0 %v246_v4, %s584_s30  ;;  %p530_p3 = pnand %p529_p2, %p523_p13 }
  0x8b   : > { %v250_v5 = vpop.permute.xlu0 %249 }
  0x8c   : > { %464 = vmatprep.mubr.msk.f32.mxu1 %vm149_vm0, %v250_v5 }
  0x8f   : > { %v252_v6 = vpop.permute.xlu0 %251 }
  0x90   : > { %465 = vmatmul.mubr.msk.f32.vlgmr.msra.gmra.mrb[0].mxu1 %vm149_vm0, %v252_v6 }
  0xed   : > { %v459_v7 = vpop.f32.mrb[0].mxu0 }
  0xee   : > { %233 = vst.msk [vmem:[%s667_s5 + $0x8] sm:$0xff] %vm231_vm1, %v459_v7  ;;  %238 = vrot.lane.b32.xlu1 %v459_v7, %s585_s6  ;;  %v222_v8 = vpop.f32.mrb[1].mxu0 }
  0xef   : > { %232 = vst.msk [vmem:[%s667_s5] sm:$0xff] %vm231_vm1, %v222_v8 }
  0xf2   : > { %236 = vrot.lane.b32.xlu1 %v222_v8, %s585_s6 }
 0x160   : > { %v239_v9 = vpop.permute.xlu1 %238 }
 0x161   : > { %244 = vst.msk [vmem:[%s667_s5 + $0x8] sm:$0xff] %vm242_vm2, %v239_v9 }
 0x163   : > { %v466_v10 = vpop.f32.mrb[0].mxu1 }
 0x164   : > { %v323_v11 = vpop.f32.mrb[1].mxu1  ;;  %336 = vrot.lane.b32.xlu1 %v466_v10, %s586_s7  ;;  %v237_v12 = vpop.permute.xlu1 %236 }
 0x165   : > { %334 = vrot.lane.b32.xlu0 %v323_v11, %s586_s7  ;;  %243 = vst.msk [vmem:[%s667_s5] sm:$0xff] %vm242_vm2, %v237_v12 }
 0x168   : > { %345 = vrot.lane.b32.xlu1 %v466_v10, %s587_s8 }
 0x169   : > { %343 = vrot.lane.b32.xlu0 %v323_v11, %s587_s8 }
 0x1d6   : > { %v337_v13 = vpop.permute.xlu1 %336 }
 0x1d7   : > { %342 = vst.msk [vmem:[%s667_s5 + $0x8] sm:$0xff] %vm340_vm3, %v337_v13  ;;  %v335_v14 = vpop.permute.xlu0 %334 }
 0x1d8   : > { %341 = vst.msk [vmem:[%s667_s5] sm:$0xff] %vm340_vm3, %v335_v14 }
 0x1da   : > { %v346_v15 = vpop.permute.xlu1 %345 }
 0x1db   : > { %351 = vst.msk [vmem:[%s667_s5 + $0x8] sm:$0xff] %vm349_vm4, %v346_v15  ;;  %v344_v16 = vpop.permute.xlu0 %343 }
 0x1dc   : > { %350 = vst.msk [vmem:[%s667_s5] sm:$0xff] %vm349_vm4, %v344_v16 }
 0x1dd   : > { %533 = shalt.err (!%p530_p3)
}
 0x1de   : > { %s534_s27 = scalar_lea.hbm %s680_s22, 256  ;;  %s538_s30 = scalar_lea.hbm %s731_s2, 1024 }
 0x1df   : > { %p535_p4 = scmp.ne.s32.totalorder %s680_s22, %s534_s27  ;;  %p539_p9 = scmp.lt.u32.totalorder %s680_s22, %s731_s2 }
 0x1e0   : > { %p540_p10 = scmp.lt.u32.totalorder %s538_s30, %s534_s27  ;;  %p542_p12 = scmp.lt.u32.totalorder %s534_s27, %s680_s22 }
 0x1e1   : > { %p536_p7 = pnand %p535_p4, %p644_p5 }
 0x1e2   : > { %p541_p11 = por %p540_p10, %p539_p9 }
 0x1e3   : > { %p537_p8 = pneg %p536_p7 }
 0x1e4   : > { %p543_p13 = por %p542_p12, %p541_p11 }
 0x1e6   : > { %p544_p0 = pnand %p543_p13, %p537_p8 }
 0x1e8   : > { %547 = shalt.err (!%p544_p0)
}
 0x1e9   : > { %s589_s5 = smov 128   ;;  %s590_s6 = smov 8  }
 0x1ea   : > { %475 = dma.vmem_to_hbm [thread:$0]  (%p644_p5), %s682_s16, 256, %s680_s22, %s688_s13, %s589_s5, %s589_s5, %s590_s6  }
 0x1eb PF: > { %p481_p1 = scmp.ge.s32.totalorder %s582_s12, 2  ;;  %s381_s7 = sand.u32 1, %s570_s9  }
 0x1ec   : > { %s382_s8 = scalar_lea.sflag [#allocation3], %s381_s7 }
 0x1ed   : > { %p478_p2 = pnand %p481_p1, %p648_p6 }
 0x1ef   : > { %565 = dma.done.wait (!%p478_p2), %s382_s8, 256  }
 0x1f0   : > { %567 = vsyncadd (!%p478_p2), %s382_s8, 4294967040  ;;  %p12_p3 = scmp.ge.s32.totalorder %s631_s15, 6   ;;  %s734_s9 = smov %s574_s10 }
 0x1f1   : > { %s735_s10 = smov %s578_s11  ;;  %s736_s11 = smov %s642_s18 }
 0x1f2   : > { %s737_s12 = smov %s631_s15  ;;  %14 = sbr.rel (!%p12_p3) target bundleno = 3 (0x3), region = 63 }
 0x1f9   :  { %387 = vsyncpa [#allocation3], 1 }
 0x1fa   :  { %389 = vsyncpa [#allocation3 + $0x1], 1 }

// kernel: tpu_custom_call.1
= control target key start
LH: loop header
LB: loop body
LE: loop exit
PB: predicated region body
PF: predicated region fallthrough
CT: control target
= control target key end

     0   :  { %7 = vsyncpa [#allocation3], 0  ;;  %s729_s0 = inlined_call_operand.vmem [shape: f32[16,32], index: 0, kind: input, shape index: {}]   ;;  %s730_s1 = inlined_call_operand.vmem [shape: f32[64,32], index: 1, kind: input, shape index: {}]   ;;  %s731_s2 = inlined_call_operand.hbm [shape: f32[64,128], index: 2, kind: output, shape index: {}]  }
   0x1   :  { %9 = vsyncpa [#allocation3 + $0x1], 0  ;;  %s606_s9 = smov 0   ;;  %s608_s10 = smov 0  }
   0x2   :  { %s610_s11 = smov 0   ;;  %s612_s12 = smov 0  }
   0x3 LB: > { %s627_s13 = sadd.s32 4294967295, %s582_s12   ;;  %s428_s14 = sadd.s32 4294967294, %s582_s12   ;;  %s582_s12 = sphi %s612_s12, %s737_s12   ;;  %s578_s11 = sphi %s610_s11, %s736_s11   ;;  %s574_s10 = sphi %s608_s10, %s735_s10   ;;  %s570_s9 = sphi %s606_s9, %s734_s9  }
   0x4   : > { %s631_s15 = sadd.s32 1, %s582_s12   ;;  %s69_s16 = sadd.s32 1, %s578_s11 }
   0x5   : > { %s66_s17 = ssub.s32 %s582_s12, %s631_s15  ;;  %p79_p0 = scmp.ne.s32.totalorder %s578_s11, %s574_s10 }
   0x6   : > { %p67_p1 = scmp.eq.s32.totalorder %s66_s17, 0  ;;  %p80_p2 = scmp.eq.s32.totalorder %s627_s13, 3 }
   0x7   : > { %p85_p3 = scmp.ne.s32.totalorder %s574_s10, %s570_s9  ;;  %p86_p4 = scmp.eq.s32.totalorder %s428_s14, 3 }
   0x8   : > { %s642_s18 = scalar_select %p67_p1, %s578_s11, %s69_s16  }
   0x9   : > { %p644_p5 = por %p80_p2, %p79_p0  ;;  %p648_p6 = por %p86_p4, %p85_p3 }
   0xa   : > { %p431_p7 = scmp.ge.s32.totalorder %s582_s12, 1  ;;  %p116_p8 = scmp.lt.s32.totalorder %s582_s12, 5 }
   0xc   : > { %p117_p9 = pnand %p431_p7, %p116_p8 }
   0xd   : > { %s433_s21 = sshll.u32 (!%p117_p9), %s627_s13, 1  ;;  %v145_v0 = vld [vmem:[%s729_s0] sm:$0xff] (!%p117_p9)  ;;  %v146_v1 = vld [vmem:[%s729_s0 + $0x8] sm:$0xff] (!%p117_p9)  ;;  %vm149_vm0 = vcmask (!%p117_p9), 130048   ;;  %s584_s30 = smov (!%p117_p9), 112   ;;  %vm231_vm1 = vcmask (!%p117_p9), 261120  }
   0xe   : > { %120 = sbr.rel (%p117_p9) target bundleno = 491 (0x1eb), region = 28  ;;  %p139_p10 = scmp.lt.s32.totalorder (!%p117_p9), %s433_s21, 7  ;;  %v467_v2 = vpack.c.bf16 (!%p117_p9), %v146_v1, %v145_v0  ;;  %vm242_vm2 = vcmask (!%p117_p9), 523520   ;;  %vm340_vm3 = vcmask (!%p117_p9), 785920   ;;  %vm349_vm4 = vcmask (!%p117_p9), 1048320  }
   0xf   : > { %s135_s3 = sand.u32 (!%p117_p9), 1, %s574_s10   ;;  %s585_s6 = smov (!%p117_p9), 32  }
  0x10   : > { %468 = vmatprep.subr.bf16.mxu0 (!%p117_p9), %v467_v2  ;;  %472 = vmatprep.subr.bf16.mxu1 (!%p117_p9), %v467_v2  ;;  %s432_s4 = sshll.u32 (!%p117_p9), %s135_s3, 4  ;;  %s586_s7 = smov (!%p117_p9), 64  }
  0x11   : > { %470 = vmatpush3.bf16.msra.mxu0 (!%p117_p9), %v467_v2  ;;  %474 = vmatpush3.bf16.msra.mxu1 (!%p117_p9), %v467_v2  ;;  %s667_s5 = scalar_lea.vmem (!%p117_p9), [#allocation2], %s432_s4  ;;  %s587_s8 = smov (!%p117_p9), 96  }
  0x12   : > { %s444_s14 = sshll.u32 (!%p117_p9), %s627_s13, 8  ;;  %s366_s16 = sshll.u32 (!%p117_p9), %s667_s5, 4  ;;  %s682_s16 = int_to_ptr.vmem [resolvable:$true] %s366_s16 }
  0x13   : > { %s680_s22 = scalar_lea.hbm (!%p117_p9), %s731_s2, %s444_s14  ;;  %s688_s13 = scalar_lea.sflag (!%p117_p9), [#allocation3], %s135_s3 }
  0x14   : > { %s520_s23 = scalar_lea.vmem (!%p117_p9), %s682_s16, 256  ;;  %s588_s24 = smov (!%p117_p9), [#allocation2]  }
  0x15   : > { %s739_s21 = smov (!%p139_p10, %s433_s21), 7  ;;  %p521_p11 = scmp.ne.s32.totalorder %s682_s16, %s520_s23 }
  0x16   : > { %s434_s26 = sshll.u32 %s739_s21, 3  ;;  %s524_s25 = sshll.u32 %s588_s24, 4  ;;  %s525_s25 = int_to_ptr.vmem [resolvable:$false] %s524_s25 }
  0x17   : > { %s142_s29 = scalar_lea.vmem %s730_s1, %s434_s26  ;;  %p522_p12 = pnand %p521_p11, %p644_p5 }
  0x18   : > { %v245_v3 = vld [vmem:[%s142_s29] sm:$0xff]  ;;  %v246_v4 = vld [vmem:[%s142_s29 + $0x8] sm:$0xff]  ;;  %s526_s26 = scalar_lea.vmem %s525_s25, 512  ;;  %p527_p0 = scmp.lt.s32.totalorder %s682_s16, %s525_s25 }
  0x19   : > { %249 = vrot.lane.b32.xlu0 %v245_v3, %s584_s30  ;;  %457 = vmatprep.mubr.msk.f32.mxu0 %vm149_vm0, %v245_v3  ;;  %p523_p13 = pneg %p522_p12  ;;  %p528_p1 = scmp.lt.s32.totalorder %s526_s26, %s520_s23 }
  0x1a   : > { %458 = vmatmul.mubr.msk.f32.vlgmr.msra.gmra.mrb[0].mxu0 %vm149_vm0, %v246_v4 }
  0x1b   : > { %p529_p2 = por %p528_p1, %p527_p0 }
  0x1d   : > { %251 = vrot.lane.b32.xlu0 %v246_v4, %s584_s30  ;;  %p530_p3 = pnand %p529_p2, %p523_p13 }
  0x8b   : > { %v250_v5 = vpop.permute.xlu0 %249 }
  0x8c   : > { %464 = vmatprep.mubr.msk.f32.mxu1 %vm149_vm0, %v250_v5 }
  0x8f   : > { %v252_v6 = vpop.permute.xlu0 %251 }
  0x90   : > { %465 = vmatmul.mubr.msk.f32.vlgmr.msra.gmra.mrb[0].mxu1 %vm149_vm0, %v252_v6 }
  0xed   : > { %v459_v7 = vpop.f32.mrb[0].mxu0 }
  0xee   : > { %233 = vst.msk [vmem:[%s667_s5 + $0x8] sm:$0xff] %vm231_vm1, %v459_v7  ;;  %238 = vrot.lane.b32.xlu1 %v459_v7, %s585_s6  ;;  %v222_v8 = vpop.f32.mrb[1].mxu0 }
  0xef   : > { %232 = vst.msk [vmem:[%s667_s5] sm:$0xff] %vm231_vm1, %v222_v8 }
  0xf2   : > { %236 = vrot.lane.b32.xlu1 %v222_v8, %s585_s6 }
 0x160   : > { %v239_v9 = vpop.permute.xlu1 %238 }
 0x161   : > { %244 = vst.msk [vmem:[%s667_s5 + $0x8] sm:$0xff] %vm242_vm2, %v239_v9 }
 0x163   : > { %v466_v10 = vpop.f32.mrb[0].mxu1 }
 0x164   : > { %v323_v11 = vpop.f32.mrb[1].mxu1  ;;  %336 = vrot.lane.b32.xlu1 %v466_v10, %s586_s7  ;;  %v237_v12 = vpop.permute.xlu1 %236 }
 0x165   : > { %334 = vrot.lane.b32.xlu0 %v323_v11, %s586_s7  ;;  %243 = vst.msk [vmem:[%s667_s5] sm:$0xff] %vm242_vm2, %v237_v12 }
 0x168   : > { %345 = vrot.lane.b32.xlu1 %v466_v10, %s587_s8 }
 0x169   : > { %343 = vrot.lane.b32.xlu0 %v323_v11, %s587_s8 }
 0x1d6   : > { %v337_v13 = vpop.permute.xlu1 %336 }
 0x1d7   : > { %342 = vst.msk [vmem:[%s667_s5 + $0x8] sm:$0xff] %vm340_vm3, %v337_v13  ;;  %v335_v14 = vpop.permute.xlu0 %334 }
 0x1d8   : > { %341 = vst.msk [vmem:[%s667_s5] sm:$0xff] %vm340_vm3, %v335_v14 }
 0x1da   : > { %v346_v15 = vpop.permute.xlu1 %345 }
 0x1db   : > { %351 = vst.msk [vmem:[%s667_s5 + $0x8] sm:$0xff] %vm349_vm4, %v346_v15  ;;  %v344_v16 = vpop.permute.xlu0 %343 }
 0x1dc   : > { %350 = vst.msk [vmem:[%s667_s5] sm:$0xff] %vm349_vm4, %v344_v16 }
 0x1dd   : > { %533 = shalt.err (!%p530_p3)
}
 0x1de   : > { %s534_s27 = scalar_lea.hbm %s680_s22, 256  ;;  %s538_s30 = scalar_lea.hbm %s731_s2, 1024 }
 0x1df   : > { %p535_p4 = scmp.ne.s32.totalorder %s680_s22, %s534_s27  ;;  %p539_p9 = scmp.lt.u32.totalorder %s680_s22, %s731_s2 }
 0x1e0   : > { %p540_p10 = scmp.lt.u32.totalorder %s538_s30, %s534_s27  ;;  %p542_p12 = scmp.lt.u32.totalorder %s534_s27, %s680_s22 }
 0x1e1   : > { %p536_p7 = pnand %p535_p4, %p644_p5 }
 0x1e2   : > { %p541_p11 = por %p540_p10, %p539_p9 }
 0x1e3   : > { %p537_p8 = pneg %p536_p7 }
 0x1e4   : > { %p543_p13 = por %p542_p12, %p541_p11 }
 0x1e6   : > { %p544_p0 = pnand %p543_p13, %p537_p8 }
 0x1e8   : > { %547 = shalt.err (!%p544_p0)
}
 0x1e9   : > { %s589_s5 = smov 128   ;;  %s590_s6 = smov 8  }
 0x1ea   : > { %475 = dma.vmem_to_hbm [thread:$0]  (%p644_p5), %s682_s16, 256, %s680_s22, %s688_s13, %s589_s5, %s589_s5, %s590_s6  }
 0x1eb PF: > { %p481_p1 = scmp.ge.s32.totalorder %s582_s12, 2  ;;  %s381_s7 = sand.u32 1, %s570_s9  }
 0x1ec   : > { %s382_s8 = scalar_lea.sflag [#allocation3], %s381_s7 }
 0x1ed   : > { %p478_p2 = pnand %p481_p1, %p648_p6 }
 0x1ef   : > { %565 = dma.done.wait (!%p478_p2), %s382_s8, 256  }
 0x1f0   : > { %567 = vsyncadd (!%p478_p2), %s382_s8, 4294967040  ;;  %p12_p3 = scmp.ge.s32.totalorder %s631_s15, 6   ;;  %s734_s9 = smov %s574_s10 }
 0x1f1   : > { %s735_s10 = smov %s578_s11  ;;  %s736_s11 = smov %s642_s18 }
 0x1f2   : > { %s737_s12 = smov %s631_s15  ;;  %14 = sbr.rel (!%p12_p3) target bundleno = 3 (0x3), region = 63 }
 0x1f9   :  { %387 = vsyncpa [#allocation3], 1 }
 0x1fa   :  { %389 = vsyncpa [#allocation3 + $0x1], 1 }

</bundles_post_ra>
